<compile_context>
chip_gen: v5e
topology: v5e:2x2
jax: 0.10.0
libtpu: 0.0.40
codegen_flags: <defaults>
</compile_context>

<pallas_src>
import jax
import jax.numpy as jnp
from jax.experimental import pallas as pl
from jax.experimental.pallas import tpu as pltpu

# Head widths and fused/padded dimensions.
RACE, AGE, GENDER = 7, 4, 2
LOGITS = RACE + AGE + GENDER          # 13
OUT_PAD = 128                         # lane-dense output slab width
HID1 = 256                            # shared_fc width
HID2 = 128                            # per-head fc1 width
HID2_CAT = 3 * HID2                   # fused head-fc1 width (384)

VMEM_BUDGET = 40 * 1024 * 1024        # working-set budget (v7x TC has 64 MiB)
VMEM_CAP = 48 * 1024 * 1024           # never ask Mosaic for more than this


def _round_up(n, m):
    return ((n + m - 1) // m) * m


def _cdiv(a, b):
    return (a + b - 1) // b


# ----------------------------------------------------------------------------
# Kernel
# ----------------------------------------------------------------------------
def _classifier_kernel(x_ref, ws_ref, bs_ref, w1_ref, b1_ref, w2_ref, b2_ref,
                       out_ref):
    cdt = ws_ref.dtype

    # x streams in as f32; cast to the MXU compute dtype in-kernel (VPU work
    # hidden under the tile DMA) instead of a wrapper-side HBM round trip.
    x = x_ref[...].astype(cdt)

    # shared = relu(x @ Ws + bs)                              [TILE_B, 256]
    shared = jnp.dot(x, ws_ref[...], preferred_element_type=jnp.float32)
    shared = jnp.maximum(shared + bs_ref[...], 0.0)

    # Fused head fc1: one 384-wide MXU pass instead of three 128-wide ones.
    hidden = jnp.dot(shared.astype(cdt), w1_ref[...],
                     preferred_element_type=jnp.float32)
    hidden = jnp.maximum(hidden + b1_ref[...], 0.0)          # [TILE_B, 384]

    # Fused head fc2: block-diagonal [384, 128] weight -> lane-dense slab.
    logits = jnp.dot(hidden.astype(cdt), w2_ref[...],
                     preferred_element_type=jnp.float32) + b2_ref[...]
    out_ref[...] = logits.astype(out_ref.dtype)               # [TILE_B, 128]


# ----------------------------------------------------------------------------
# Parameter fusion (one-time prep, outside the kernel)
# ----------------------------------------------------------------------------
def fuse_params(params, compute_dtype=jnp.bfloat16):
    """Fuse the three heads and zero-pad to lane-dense width.

    Weights are stored [in_features, out_features]; biases are [1, out] and
    stay float32 (bias-add / ReLU run in f32 on the VPU)."""
    w1 = jnp.concatenate([params["wr1"], params["wa1"], params["wg1"]], axis=1)
    b1 = jnp.concatenate([params["br1"], params["ba1"], params["bg1"]], axis=1)

    w2 = jnp.zeros((HID2_CAT, OUT_PAD), jnp.float32)
    w2 = w2.at[0 * HID2:1 * HID2, 0:RACE].set(params["wr2"])
    w2 = w2.at[1 * HID2:2 * HID2, RACE:RACE + AGE].set(params["wa2"])
    w2 = w2.at[2 * HID2:3 * HID2, RACE + AGE:LOGITS].set(params["wg2"])

    b2 = jnp.zeros((1, OUT_PAD), jnp.float32)
    b2 = b2.at[:, 0:RACE].set(params["br2"])
    b2 = b2.at[:, RACE:RACE + AGE].set(params["ba2"])
    b2 = b2.at[:, RACE + AGE:LOGITS].set(params["bg2"])

    return dict(
        ws=params["ws"].astype(compute_dtype),
        bs=params["bs"].astype(jnp.float32),
        w1=w1.astype(compute_dtype),
        b1=b1.astype(jnp.float32),
        w2=w2.astype(compute_dtype),
        b2=b2.astype(jnp.float32),
    )


# ----------------------------------------------------------------------------
# Tiling / VMEM sizing helpers (all static Python ints)
# ----------------------------------------------------------------------------
def _vmem_bytes(tile_b, E, w_itemsize, out_itemsize):
    # Double-buffered streamed tiles: x (f32 in HBM) and output slab.
    streamed = 2 * tile_b * (E * 4 + OUT_PAD * out_itemsize)
    # Resident weights/biases (constant index_map, default buffering counted).
    resident = 2 * ((E * HID1 + HID1 * HID2_CAT + HID2_CAT * OUT_PAD) * w_itemsize
                    + (HID1 + HID2_CAT + OUT_PAD) * 4)
    # In-kernel intermediates (cast copies + f32 activations + logits).
    interm = tile_b * (E * w_itemsize
                       + HID1 * (4 + w_itemsize)
                       + HID2_CAT * (4 + w_itemsize)
                       + OUT_PAD * 4)
    return streamed + resident + interm


def _choose_tile_b(B, E, max_tile_b, w_itemsize, out_itemsize):
    n_tiles = max(1, _cdiv(B, max_tile_b))
    if B >= 32:
        # Give the "parallel" batch axis >= 2 grid steps so both v7x
        # TensorCores get work (no-op cost on v5e/v6e at these sizes).
        n_tiles = max(n_tiles, 2)
    tile_b = _round_up(_cdiv(B, n_tiles), 16)   # bf16 packs 2 rows/sublane
    # Shrink the tile if the footprint would blow the VMEM budget (large E).
    while tile_b > 16 and _vmem_bytes(tile_b, E, w_itemsize,
                                      out_itemsize) > VMEM_BUDGET:
        tile_b = max(16, _round_up(tile_b // 2, 16))
    if tile_b >= B:
        tile_b = B   # single full-extent block (legal for any B)
    return tile_b


# ----------------------------------------------------------------------------
# Wrapper
# ----------------------------------------------------------------------------
def protected_attribute_classifier(x, fused, *, max_tile_b=2048):
    """x: [B, E] float32 (passed through un-cast).  fused: fuse_params() output.

    Returns (race_logits [B,7], age_logits [B,4], gender_logits [B,2]), f32."""
    B, E = x.shape
    compute_dtype = fused["ws"].dtype
    out_dtype = compute_dtype                 # bf16 slab on the bf16 path
    w_itemsize = jnp.dtype(compute_dtype).itemsize
    out_itemsize = jnp.dtype(out_dtype).itemsize

    tile_b = _choose_tile_b(B, E, max_tile_b, w_itemsize, out_itemsize)
    grid = (_cdiv(B, tile_b),)                # ragged final tile: no jnp.pad copy

    vmem_est = _vmem_bytes(tile_b, E, w_itemsize, out_itemsize)
    vmem_limit = min(VMEM_CAP, max(4 * 1024 * 1024, 2 * vmem_est))

    flops = 2 * B * (E * HID1 + HID1 * HID2_CAT + HID2_CAT * OUT_PAD)
    bytes_accessed = (
        B * E * 4                                                     # x (f32)
        + (E * HID1 + HID1 * HID2_CAT + HID2_CAT * OUT_PAD) * w_itemsize
        + (HID1 + HID2_CAT + OUT_PAD) * 4                             # biases
        + B * OUT_PAD * out_itemsize                                  # out slab
    )

    out = pl.pallas_call(
        _classifier_kernel,
        out_shape=jax.ShapeDtypeStruct((B, OUT_PAD), out_dtype),
        grid=grid,
        in_specs=[
            pl.BlockSpec((tile_b, E), lambda i: (i, 0)),         # x: streamed f32
            pl.BlockSpec((E, HID1), lambda i: (0, 0)),           # Ws: resident
            pl.BlockSpec((1, HID1), lambda i: (0, 0)),           # bs
            pl.BlockSpec((HID1, HID2_CAT), lambda i: (0, 0)),    # W1cat
            pl.BlockSpec((1, HID2_CAT), lambda i: (0, 0)),       # b1cat
            pl.BlockSpec((HID2_CAT, OUT_PAD), lambda i: (0, 0)),  # W2 block-diag
            pl.BlockSpec((1, OUT_PAD), lambda i: (0, 0)),        # b2 padded
        ],
        out_specs=pl.BlockSpec((tile_b, OUT_PAD), lambda i: (i, 0)),
        compiler_params=pltpu.CompilerParams(
            dimension_semantics=("parallel",),
            vmem_limit_bytes=vmem_limit,
        ),
        cost_estimate=pl.CostEstimate(
            flops=flops, transcendentals=0, bytes_accessed=bytes_accessed),
    )(x, fused["ws"], fused["bs"], fused["w1"], fused["b1"],
      fused["w2"], fused["b2"])

    race = out[:, 0:RACE].astype(jnp.float32)
    age = out[:, RACE:RACE + AGE].astype(jnp.float32)
    gender = out[:, RACE + AGE:LOGITS].astype(jnp.float32)
    return race, age, gender


# ----------------------------------------------------------------------------
# Init + pure-JAX reference (for the self-test)
# ----------------------------------------------------------------------------
def init_params(key, embedding_dim, race_classes=7, age_classes=4,
                gender_classes=2):
    """torch.nn.Linear-like init (uniform +/- 1/sqrt(fan_in)).
    Weights stored as [in_features, out_features] (transposed vs. PyTorch)."""
    def linear(k, fan_in, fan_out):
        kw, kb = jax.random.split(k)
        bound = 1.0 / (fan_in ** 0.5)
        w = jax.random.uniform(kw, (fan_in, fan_out), jnp.float32, -bound, bound)
        b = jax.random.uniform(kb, (1, fan_out), jnp.float32, -bound, bound)
        return w, b

    keys = jax.random.split(key, 7)
    ws, bs = linear(keys[0], embedding_dim, HID1)
    wr1, br1 = linear(keys[1], HID1, HID2)
    wr2, br2 = linear(keys[2], HID2, race_classes)
    wa1, ba1 = linear(keys[3], HID1, HID2)
    wa2, ba2 = linear(keys[4], HID2, age_classes)
    wg1, bg1 = linear(keys[5], HID1, HID2)
    wg2, bg2 = linear(keys[6], HID2, gender_classes)
    return dict(ws=ws, bs=bs, wr1=wr1, br1=br1, wr2=wr2, br2=br2,
                wa1=wa1, ba1=ba1, wa2=wa2, ba2=ba2,
                wg1=wg1, bg1=bg1, wg2=wg2, bg2=bg2)


def _reference_forward(x, p, compute_dtype=jnp.float32):
    """Pure-JAX reference on the ORIGINAL (unfused) params."""
    relu = lambda v: jnp.maximum(v, 0.0)
    dot = lambda a, w: jnp.dot(a.astype(compute_dtype), w.astype(compute_dtype),
                               preferred_element_type=jnp.float32)
    shared = relu(dot(x, p["ws"]) + p["bs"])
    race = dot(relu(dot(shared, p["wr1"]) + p["br1"]), p["wr2"]) + p["br2"]
    age = dot(relu(dot(shared, p["wa1"]) + p["ba1"]), p["wa2"]) + p["ba2"]
    gender = dot(relu(dot(shared, p["wg1"]) + p["bg1"]), p["wg2"]) + p["bg2"]
    return race, age, gender


if __name__ == "__main__":
    key = jax.random.PRNGKey(0)
    k_x, k_x2, k_p = jax.random.split(key, 3)

    embedding_dim = 32
    params = init_params(k_p, embedding_dim)

    # --- f32 operand path, single tile (B=8): tight check ---------------------
    x8 = jax.random.normal(k_x, (8, embedding_dim), jnp.float32)
    fused_f32 = fuse_params(params, compute_dtype=jnp.float32)
    r32, a32, g32 = protected_attribute_classifier(x8, fused_f32)
    jax.block_until_ready((r32, a32, g32))

    rr, ra, rg = _reference_forward(x8, params, jnp.float32)
    assert r32.shape == (8, RACE)
    assert a32.shape == (8, AGE)
    assert g32.shape == (8, GENDER)
    assert jnp.allclose(r32, rr, atol=1e-4, rtol=1e-4)
    assert jnp.allclose(a32, ra, atol=1e-4, rtol=1e-4)
    assert jnp.allclose(g32, rg, atol=1e-4, rtol=1e-4)

    # --- f32 path, multi-step grid with ragged final tile (B=50, tile 16) -----
    x50 = jax.random.normal(k_x2, (50, embedding_dim), jnp.float32)
    r50, a50, g50 = protected_attribute_classifier(x50, fused_f32, max_tile_b=16)
    jax.block_until_ready((r50, a50, g50))

    rr50, ra50, rg50 = _reference_forward(x50, params, jnp.float32)
    assert r50.shape == (50, RACE)
    assert jnp.allclose(r50, rr50, atol=1e-4, rtol=1e-4)
    assert jnp.allclose(a50, ra50, atol=1e-4, rtol=1e-4)
    assert jnp.allclose(g50, rg50, atol=1e-4, rtol=1e-4)

    # --- bf16 operand / bf16 slab / f32-accumulate path -----------------------
    fused_bf16 = fuse_params(params, compute_dtype=jnp.bfloat16)
    r16, a16, g16 = protected_attribute_classifier(x8, fused_bf16)
    jax.block_until_ready((r16, a16, g16))

    rr16, ra16, rg16 = _reference_forward(x8, params, jnp.bfloat16)
    assert jnp.allclose(r16, rr16, atol=3e-2, rtol=3e-2)
    assert jnp.allclose(a16, ra16, atol=3e-2, rtol=3e-2)
    assert jnp.allclose(g16, rg16, atol=3e-2, rtol=3e-2)

    print("KERNEL_OK")
</pallas_src>

<mosaic_0001>
module attributes {stable_mosaic.version = 11 : i64} {
  func.func @_classifier_kernel(%arg0: i32, %arg1: memref<8x32xf32, #tpu.memory_space<vmem>>, %arg2: memref<32x256xf32, #tpu.memory_space<vmem>>, %arg3: memref<1x256xf32, #tpu.memory_space<vmem>>, %arg4: memref<256x384xf32, #tpu.memory_space<vmem>>, %arg5: memref<1x384xf32, #tpu.memory_space<vmem>>, %arg6: memref<384x128xf32, #tpu.memory_space<vmem>>, %arg7: memref<1x128xf32, #tpu.memory_space<vmem>>, %arg8: memref<8x128xf32, #tpu.memory_space<vmem>>) attributes {dimension_semantics = [#tpu.dimension_semantics<parallel>], iteration_bounds = array<i64: 1>, scalar_prefetch = 0 : i64, scratch_operands = 0 : i64, tpu.core_type = #tpu.core_type<tc>, window_params = [{transform_indices = @transform_0, window_bounds = array<i64: 8, 32>}, {pipeline_mode = #tpu.pipeline_mode<synchronous>, transform_indices = @transform_1, window_bounds = array<i64: 32, 256>}, {pipeline_mode = #tpu.pipeline_mode<synchronous>, transform_indices = @transform_2, window_bounds = array<i64: 1, 256>}, {pipeline_mode = #tpu.pipeline_mode<synchronous>, transform_indices = @transform_3, window_bounds = array<i64: 256, 384>}, {pipeline_mode = #tpu.pipeline_mode<synchronous>, transform_indices = @transform_4, window_bounds = array<i64: 1, 384>}, {pipeline_mode = #tpu.pipeline_mode<synchronous>, transform_indices = @transform_5, window_bounds = array<i64: 384, 128>}, {pipeline_mode = #tpu.pipeline_mode<synchronous>, transform_indices = @transform_6, window_bounds = array<i64: 1, 128>}, {transform_indices = @transform_7, window_bounds = array<i64: 8, 128>}]} {
    %c0 = arith.constant 0 : index
    %c0_0 = arith.constant 0 : index
    %0 = vector.load %arg1[%c0, %c0_0] : memref<8x32xf32, #tpu.memory_space<vmem>>, vector<8x32xf32>
    %c0_1 = arith.constant 0 : index
    %c0_2 = arith.constant 0 : index
    %1 = vector.load %arg2[%c0_1, %c0_2] : memref<32x256xf32, #tpu.memory_space<vmem>>, vector<32x256xf32>
    %cst = arith.constant dense<0.000000e+00> : vector<8x256xf32>
    %2 = tpu.matmul %0, %1, %cst {dimension_numbers = #tpu.dot_dimension_numbers<[1], [0], [0], [1], [0, 0, 1, 1], [], []>} : vector<8x32xf32>, vector<32x256xf32>, vector<8x256xf32> -> vector<8x256xf32>
    %c0_3 = arith.constant 0 : index
    %c0_4 = arith.constant 0 : index
    %3 = vector.load %arg3[%c0_3, %c0_4] : memref<1x256xf32, #tpu.memory_space<vmem>>, vector<1x256xf32>
    %4 = vector.broadcast %3 : vector<1x256xf32> to vector<8x256xf32>
    %5 = arith.addf %2, %4 : vector<8x256xf32>
    %cst_5 = arith.constant 0.000000e+00 : f32
    %6 = vector.broadcast %cst_5 : f32 to vector<8x256xf32>
    %7 = arith.maximumf %5, %6 : vector<8x256xf32>
    %c0_6 = arith.constant 0 : index
    %c0_7 = arith.constant 0 : index
    %8 = vector.load %arg4[%c0_6, %c0_7] : memref<256x384xf32, #tpu.memory_space<vmem>>, vector<256x384xf32>
    %cst_8 = arith.constant dense<0.000000e+00> : vector<8x384xf32>
    %9 = tpu.matmul %7, %8, %cst_8 {dimension_numbers = #tpu.dot_dimension_numbers<[1], [0], [0], [1], [0, 0, 1, 1], [], []>} : vector<8x256xf32>, vector<256x384xf32>, vector<8x384xf32> -> vector<8x384xf32>
    %c0_9 = arith.constant 0 : index
    %c0_10 = arith.constant 0 : index
    %10 = vector.load %arg5[%c0_9, %c0_10] : memref<1x384xf32, #tpu.memory_space<vmem>>, vector<1x384xf32>
    %11 = vector.broadcast %10 : vector<1x384xf32> to vector<8x384xf32>
    %12 = arith.addf %9, %11 : vector<8x384xf32>
    %cst_11 = arith.constant 0.000000e+00 : f32
    %13 = vector.broadcast %cst_11 : f32 to vector<8x384xf32>
    %14 = arith.maximumf %12, %13 : vector<8x384xf32>
    %c0_12 = arith.constant 0 : index
    %c0_13 = arith.constant 0 : index
    %15 = vector.load %arg6[%c0_12, %c0_13] : memref<384x128xf32, #tpu.memory_space<vmem>>, vector<384x128xf32>
    %cst_14 = arith.constant dense<0.000000e+00> : vector<8x128xf32>
    %16 = tpu.matmul %14, %15, %cst_14 {dimension_numbers = #tpu.dot_dimension_numbers<[1], [0], [0], [1], [0, 0, 1, 1], [], []>} : vector<8x384xf32>, vector<384x128xf32>, vector<8x128xf32> -> vector<8x128xf32>
    %c0_15 = arith.constant 0 : index
    %c0_16 = arith.constant 0 : index
    %17 = vector.load %arg7[%c0_15, %c0_16] : memref<1x128xf32, #tpu.memory_space<vmem>>, vector<1x128xf32>
    %18 = vector.broadcast %17 : vector<1x128xf32> to vector<8x128xf32>
    %19 = arith.addf %16, %18 : vector<8x128xf32>
    %c0_17 = arith.constant 0 : index
    %c0_18 = arith.constant 0 : index
    %20 = vector.load %arg8[%c0_17, %c0_18] : memref<8x128xf32, #tpu.memory_space<vmem>>, vector<8x128xf32>
    tpu.vector_store %arg8[%c0_17, %c0_18], %19 {strides = array<i32>} : memref<8x128xf32, #tpu.memory_space<vmem>>, vector<8x128xf32>,
    return
  }
  func.func @transform_0(%arg0: i32) -> (i32, i32) {
    %c0_i32 = arith.constant 0 : i32
    %c0_i32_0 = arith.constant 0 : i32
    return %arg0, %c0_i32 : i32, i32
  }
  func.func @transform_1(%arg0: i32) -> (i32, i32) {
    %c0_i32 = arith.constant 0 : i32
    %c0_i32_0 = arith.constant 0 : i32
    %c0_i32_1 = arith.constant 0 : i32
    return %c0_i32, %c0_i32_0 : i32, i32
  }
  func.func @transform_2(%arg0: i32) -> (i32, i32) {
    %c0_i32 = arith.constant 0 : i32
    %c0_i32_0 = arith.constant 0 : i32
    %c0_i32_1 = arith.constant 0 : i32
    return %c0_i32, %c0_i32_0 : i32, i32
  }
  func.func @transform_3(%arg0: i32) -> (i32, i32) {
    %c0_i32 = arith.constant 0 : i32
    %c0_i32_0 = arith.constant 0 : i32
    %c0_i32_1 = arith.constant 0 : i32
    return %c0_i32, %c0_i32_0 : i32, i32
  }
  func.func @transform_4(%arg0: i32) -> (i32, i32) {
    %c0_i32 = arith.constant 0 : i32
    %c0_i32_0 = arith.constant 0 : i32
    %c0_i32_1 = arith.constant 0 : i32
    return %c0_i32, %c0_i32_0 : i32, i32
  }
  func.func @transform_5(%arg0: i32) -> (i32, i32) {
    %c0_i32 = arith.constant 0 : i32
    %c0_i32_0 = arith.constant 0 : i32
    %c0_i32_1 = arith.constant 0 : i32
    return %c0_i32, %c0_i32_0 : i32, i32
  }
  func.func @transform_6(%arg0: i32) -> (i32, i32) {
    %c0_i32 = arith.constant 0 : i32
    %c0_i32_0 = arith.constant 0 : i32
    %c0_i32_1 = arith.constant 0 : i32
    return %c0_i32, %c0_i32_0 : i32, i32
  }
  func.func @transform_7(%arg0: i32) -> (i32, i32) {
    %c0_i32 = arith.constant 0 : i32
    %c0_i32_0 = arith.constant 0 : i32
    return %arg0, %c0_i32 : i32, i32
  }
}

</mosaic_0001>

<bundles_post_ra>
// kernel: tpu_custom_call.1
= control target key start
LH: loop header
LB: loop body
LE: loop exit
PB: predicated region body
PF: predicated region fallthrough
CT: control target
= control target key end

     0   :  { %12 = vsyncpa [#allocation3], 0  ;;  %s764_s0 = inlined_call_operand.hbm [shape: f32[8,32], index: 0, kind: input, shape index: {}]   ;;  %s765_s1 = inlined_call_operand.hbm [shape: f32[32,256], index: 1, kind: input, shape index: {}]   ;;  %s766_s2 = inlined_call_operand.hbm [shape: f32[1,256], index: 2, kind: input, shape index: {}]   ;;  %s767_s3 = inlined_call_operand.hbm [shape: f32[256,384], index: 3, kind: input, shape index: {}]   ;;  %s768_s4 = inlined_call_operand.vmem [shape: f32[1,384], index: 4, kind: input, shape index: {}]   ;;  %s769_s5 = inlined_call_operand.hbm [shape: f32[384,128], index: 5, kind: input, shape index: {}]   ;;  %s770_s6 = inlined_call_operand.vmem [shape: f32[1,128], index: 6, kind: input, shape index: {}]   ;;  %s771_s7 = inlined_call_operand.hbm [shape: f32[8,128], index: 7, kind: output, shape index: {}]  }
   0x1   :  { %13 = vsyncpa [#allocation6], 0 }
   0x2   :  { %14 = vsyncpa [#allocation9], 0  ;;  %s31_s26 = sshll.u32 %s765_s1, 4  ;;  %s32_s26 = int_to_ptr.hbm [resolvable:$true] %s31_s26 }
   0x3   :  { %15 = vsyncpa [#allocation4], 0  ;;  %s688_s27 = smov [#allocation5]   ;;  %s55_s8 = sshll.u32 %s767_s3, 4  ;;  %s56_s8 = int_to_ptr.hbm [resolvable:$true] %s55_s8 }
   0x4   :  { %s33_s28 = sshll.u32 %s688_s27, 4  ;;  %s689_s9 = smov 256   ;;  %s34_s28 = int_to_ptr.vmem [resolvable:$true] %s33_s28 }
   0x5   :  { %s690_s10 = smov 16   ;;  %s691_s11 = smov [#allocation8]  }
   0x6   :  { %39 = dma.hbm_to_vmem [thread:$0]  %s32_s26, 1024, %s34_s28, [#allocation6], %s689_s9, %s689_s9, %s690_s10  }
   0x7   :  { %s57_s12 = sshll.u32 %s691_s11, 4  ;;  %s692_s13 = smov 384   ;;  %s58_s12 = int_to_ptr.vmem [resolvable:$true] %s57_s12 }
   0x8   :  { %s693_s14 = smov 24   ;;  %s21_s16 = sshll.u32 %s764_s0, 4  ;;  %s22_s16 = int_to_ptr.hbm [resolvable:$true] %s21_s16 }
   0x9   :  { %63 = dma.hbm_to_vmem [thread:$0]  %s56_s8, 12288, %s58_s12, [#allocation9], %s692_s13, %s692_s13, %s693_s14  }
   0xa   :  { %s694_s17 = smov [#allocation2]   ;;  %s45_s20 = sshll.u32 %s766_s2, 4  ;;  %s46_s20 = int_to_ptr.hbm [resolvable:$true] %s45_s20 }
   0xb   :  { %s23_s18 = sshll.u32 %s694_s17, 4  ;;  %s695_s21 = smov [#allocation7]   ;;  %s24_s18 = int_to_ptr.vmem [resolvable:$true] %s23_s18 }
   0xc   :  { %26 = dma.hbm_to_vmem [thread:$0]  %s22_s16, 128, %s24_s18, [#allocation3]  }
   0xd   :  { %s47_s22 = sshll.u32 %s695_s21, 4  ;;  %s70_s25 = sshll.u32 %s769_s5, 4  ;;  %s48_s22 = int_to_ptr.vmem [resolvable:$true] %s47_s22  ;;  %s71_s25 = int_to_ptr.hbm [resolvable:$true] %s70_s25 }
   0xe   :  { %50 = dma.hbm_to_vmem [thread:$0]  %s46_s20, 32, %s48_s22, [#allocation6]  }
   0xf   :  { %s696_s0 = smov [#allocation10]   ;;  %s697_s27 = smov 128  }
  0x10   :  { %s72_s26 = sshll.u32 %s696_s0, 4  ;;  %s698_s28 = smov 8   ;;  %s73_s26 = int_to_ptr.vmem [resolvable:$true] %s72_s26 }
  0x11   :  { %78 = dma.hbm_to_vmem [thread:$0]  %s71_s25, 6144, %s73_s26, [#allocation9], %s697_s27, %s697_s27, %s698_s28  }
  0x12   :  { %680 = dma.done.wait [#allocation3], 128  }
  0x13   :  { %681 = vsyncadd [#allocation3], 4294967168 }
  0x14   :  { %682 = dma.done.wait [#allocation6], 1056  }
  0x15   :  { %683 = vsyncadd [#allocation6], 4294966240 }
  0x16   :  { %684 = dma.done.wait [#allocation9], 18432  }
  0x17   :  { %685 = vsyncadd [#allocation9], 4294948864  ;;  %v108_v0 = vld [vmem:[#allocation5 + $0x30] sm:$0xff]  ;;  %v109_v1 = vld [vmem:[#allocation5 + $0x38] sm:$0xff]  ;;  %vm116_vm0 = vcmask 261120   ;;  %s699_s30 = smov [#allocation11]  }
  0x18   :  { %v106_v2 = vld [vmem:[#allocation5 + $0x20] sm:$0xff]  ;;  %132 = vmatpush.msra.mxu0 %v108_v0  ;;  %152 = vmatpush.msra.mxu1 %v109_v1  ;;  %v107_v3 = vld [vmem:[#allocation5 + $0x28] sm:$0xff]  ;;  %v104_v4 = vld [vmem:[#allocation5 + $0x10] sm:$0xff]  ;;  %s507_s8 = sshll.u32 %s699_s30, 4  ;;  %s509_s11 = sshll.u32 %s771_s7, 4  ;;  %s508_s8 = int_to_ptr.vmem [resolvable:$true] %s507_s8  ;;  %s510_s11 = int_to_ptr.hbm [resolvable:$true] %s509_s11 }
  0x19   :  { %v105_v5 = vld [vmem:[#allocation5 + $0x18] sm:$0xff]  ;;  %v207_v6 = vld [vmem:[#allocation8 + $0x168] sm:$0xff]  ;;  %v102_v9 = vld [vmem:[#allocation5] sm:$0xff] }
  0x1a   :  { %133 = vmatpush.msra.mxu0 %v106_v2  ;;  %153 = vmatpush.msra.mxu1 %v107_v3  ;;  %v255_v7 = vld [vmem:[#allocation8 + $0x2e8] sm:$0xff]  ;;  %v204_v8 = vld [vmem:[#allocation8 + $0x150] sm:$0xff]  ;;  %v201_v13 = vld [vmem:[#allocation8 + $0x138] sm:$0xff] }
  0x1b   :  { %v103_v10 = vld [vmem:[#allocation5 + $0x8] sm:$0xff]  ;;  %266 = vmatpush.msra.mxu2 %v207_v6  ;;  %286 = vmatpush.msra.mxu3 %v255_v7  ;;  %v252_v11 = vld [vmem:[#allocation8 + $0x2d0] sm:$0xff]  ;;  %v249_v14 = vld [vmem:[#allocation8 + $0x2b8] sm:$0xff] }
  0x1c   :  { %134 = vmatpush.msra.mxu0 %v104_v4  ;;  %154 = vmatpush.msra.mxu1 %v105_v5  ;;  %v101_v12 = vld [vmem:[#allocation2] sm:$0xff]  ;;  %v198_v15 = vld [vmem:[#allocation8 + $0x120] sm:$0xff]  ;;  %v195_v17 = vld [vmem:[#allocation8 + $0x108] sm:$0xff] }
  0x1d   :  { %267 = vmatpush.msra.mxu2 %v204_v8  ;;  %287 = vmatpush.msra.mxu3 %v252_v11  ;;  %v246_v16 = vld [vmem:[#allocation8 + $0x2a0] sm:$0xff]  ;;  %v243_v18 = vld [vmem:[#allocation8 + $0x288] sm:$0xff]  ;;  %v192_v19 = vld [vmem:[#allocation8 + $0xf0] sm:$0xff] }
  0x1e   :  { %135 = vmatpush.msra.mxu0 %v102_v9  ;;  %155 = vmatpush.msra.mxu1 %v103_v10  ;;  %v208_v20 = vld [vmem:[#allocation8 + $0x170] sm:$0xff]  ;;  %v205_v22 = vld [vmem:[#allocation8 + $0x158] sm:$0xff]  ;;  %v202_v24 = vld [vmem:[#allocation8 + $0x140] sm:$0xff] }
  0x1f   :  { %521 = vmatmul.msk.f32.vlgmr.msra.gmra.mxu0 %vm116_vm0, %v101_v12  ;;  %522 = vmatmul.msk.f32.vlgmr.msra.gmra.mxu1 %vm116_vm0, %v101_v12  ;;  %v240_v21 = vld [vmem:[#allocation8 + $0x270] sm:$0xff]  ;;  %v253_v25 = vld [vmem:[#allocation8 + $0x2d8] sm:$0xff]  ;;  %v199_v28 = vld [vmem:[#allocation8 + $0x128] sm:$0xff] }
  0x20   :  { %268 = vmatpush.msra.mxu2 %v201_v13  ;;  %288 = vmatpush.msra.mxu3 %v249_v14  ;;  %v256_v23 = vld [vmem:[#allocation8 + $0x2f0] sm:$0xff]  ;;  %v189_v26 = vld [vmem:[#allocation8 + $0xd8] sm:$0xff]  ;;  %v250_v29 = vld [vmem:[#allocation8 + $0x2c0] sm:$0xff] }
  0x21   :  { %306 = vmatpush.msrb.mxu0 %v208_v20  ;;  %v237_v27 = vld [vmem:[#allocation8 + $0x258] sm:$0xff]  ;;  %326 = vmatpush.msrb.mxu1 %v256_v23  ;;  %v186_v30 = vld [vmem:[#allocation8 + $0xc0] sm:$0xff]  ;;  %v196_v32 = vld [vmem:[#allocation8 + $0x110] sm:$0xff] }
  0x22   :  { %269 = vmatpush.msra.mxu2 %v198_v15  ;;  %289 = vmatpush.msra.mxu3 %v246_v16  ;;  %v234_v31 = vld [vmem:[#allocation8 + $0x240] sm:$0xff]  ;;  %v247_v33 = vld [vmem:[#allocation8 + $0x2a8] sm:$0xff]  ;;  %v193_v36 = vld [vmem:[#allocation8 + $0xf8] sm:$0xff] }
  0x23   :  { %307 = vmatpush.msrb.mxu0 %v205_v22  ;;  %327 = vmatpush.msrb.mxu1 %v253_v25  ;;  %v183_v34 = vld [vmem:[#allocation8 + $0xa8] sm:$0xff]  ;;  %v244_v37 = vld [vmem:[#allocation8 + $0x290] sm:$0xff]  ;;  %v190_v40 = vld [vmem:[#allocation8 + $0xe0] sm:$0xff] }
  0x24   :  { %270 = vmatpush.msra.mxu2 %v195_v17  ;;  %290 = vmatpush.msra.mxu3 %v243_v18  ;;  %v231_v35 = vld [vmem:[#allocation8 + $0x228] sm:$0xff]  ;;  %v180_v38 = vld [vmem:[#allocation8 + $0x90] sm:$0xff]  ;;  %v241_v41 = vld [vmem:[#allocation8 + $0x278] sm:$0xff] }
  0x25   :  { %308 = vmatpush.msrb.mxu0 %v202_v24  ;;  %328 = vmatpush.msrb.mxu1 %v250_v29  ;;  %v228_v39 = vld [vmem:[#allocation8 + $0x210] sm:$0xff]  ;;  %v177_v42 = vld [vmem:[#allocation8 + $0x78] sm:$0xff]  ;;  %v187_v44 = vld [vmem:[#allocation8 + $0xc8] sm:$0xff] }
  0x26   :  { %271 = vmatpush.msra.mxu2 %v192_v19  ;;  %291 = vmatpush.msra.mxu3 %v240_v21  ;;  %v225_v43 = vld [vmem:[#allocation8 + $0x1f8] sm:$0xff]  ;;  %v238_v45 = vld [vmem:[#allocation8 + $0x260] sm:$0xff]  ;;  %v184_v48 = vld [vmem:[#allocation8 + $0xb0] sm:$0xff] }
  0x27   :  { %309 = vmatpush.msrb.mxu0 %v199_v28  ;;  %329 = vmatpush.msrb.mxu1 %v247_v33  ;;  %v174_v46 = vld [vmem:[#allocation8 + $0x60] sm:$0xff]  ;;  %v235_v49 = vld [vmem:[#allocation8 + $0x248] sm:$0xff]  ;;  %v181_v52 = vld [vmem:[#allocation8 + $0x98] sm:$0xff] }
  0x28   :  { %272 = vmatpush.msra.mxu2 %v189_v26  ;;  %292 = vmatpush.msra.mxu3 %v237_v27  ;;  %v222_v47 = vld [vmem:[#allocation8 + $0x1e0] sm:$0xff]  ;;  %v171_v50 = vld [vmem:[#allocation8 + $0x48] sm:$0xff]  ;;  %v232_v53 = vld [vmem:[#allocation8 + $0x230] sm:$0xff] }
  0x29   :  { %310 = vmatpush.msrb.mxu0 %v196_v32  ;;  %330 = vmatpush.msrb.mxu1 %v244_v37  ;;  %v219_v51 = vld [vmem:[#allocation8 + $0x1c8] sm:$0xff]  ;;  %v168_v54 = vld [vmem:[#allocation8 + $0x30] sm:$0xff]  ;;  %v178_v56 = vld [vmem:[#allocation8 + $0x80] sm:$0xff] }
  0x2a   :  { %273 = vmatpush.msra.mxu2 %v186_v30  ;;  %293 = vmatpush.msra.mxu3 %v234_v31  ;;  %v216_v55 = vld [vmem:[#allocation8 + $0x1b0] sm:$0xff]  ;;  %v229_v57 = vld [vmem:[#allocation8 + $0x218] sm:$0xff]  ;;  %v175_v60 = vld [vmem:[#allocation8 + $0x68] sm:$0xff] }
  0x2b   :  { %311 = vmatpush.msrb.mxu0 %v193_v36  ;;  %331 = vmatpush.msrb.mxu1 %v241_v41  ;;  %v165_v58 = vld [vmem:[#allocation8 + $0x18] sm:$0xff]  ;;  %v226_v61 = vld [vmem:[#allocation8 + $0x200] sm:$0xff]  ;;  %v172_v2 = vld [vmem:[#allocation8 + $0x50] sm:$0xff] }
  0x2c   :  { %274 = vmatpush.msra.mxu2 %v183_v34  ;;  %294 = vmatpush.msra.mxu3 %v231_v35  ;;  %v213_v59 = vld [vmem:[#allocation8 + $0x198] sm:$0xff]  ;;  %v162_v62 = vld [vmem:[#allocation8] sm:$0xff]  ;;  %v223_v3 = vld [vmem:[#allocation8 + $0x1e8] sm:$0xff] }
  0x2d   :  { %312 = vmatpush.msrb.mxu0 %v190_v40  ;;  %332 = vmatpush.msrb.mxu1 %v238_v45  ;;  %v210_v63 = vld [vmem:[#allocation8 + $0x180] sm:$0xff]  ;;  %v209_v0 = vld [vmem:[#allocation8 + $0x178] sm:$0xff]  ;;  %v203_v6 = vld [vmem:[#allocation8 + $0x148] sm:$0xff] }
  0x2e   :  { %275 = vmatpush.msra.mxu2 %v180_v38  ;;  %295 = vmatpush.msra.mxu3 %v228_v39  ;;  %v257_v1 = vld [vmem:[#allocation8 + $0x2f8] sm:$0xff]  ;;  %v206_v4 = vld [vmem:[#allocation8 + $0x160] sm:$0xff]  ;;  %v251_v7 = vld [vmem:[#allocation8 + $0x2c8] sm:$0xff] }
  0x2f   :  { %313 = vmatpush.msrb.mxu0 %v187_v44  ;;  %333 = vmatpush.msrb.mxu1 %v235_v49  ;;  %v254_v5 = vld [vmem:[#allocation8 + $0x2e0] sm:$0xff]  ;;  %v200_v8 = vld [vmem:[#allocation8 + $0x130] sm:$0xff]  ;;  %v197_v10 = vld [vmem:[#allocation8 + $0x118] sm:$0xff] }
  0x30   :  { %276 = vmatpush.msra.mxu2 %v177_v42  ;;  %296 = vmatpush.msra.mxu3 %v225_v43  ;;  %v248_v9 = vld [vmem:[#allocation8 + $0x2b0] sm:$0xff]  ;;  %v245_v11 = vld [vmem:[#allocation8 + $0x298] sm:$0xff]  ;;  %v194_v12 = vld [vmem:[#allocation8 + $0x100] sm:$0xff] }
  0x31   :  { %314 = vmatpush.msrb.mxu0 %v184_v48  ;;  %334 = vmatpush.msrb.mxu1 %v232_v53  ;;  %v242_v13 = vld [vmem:[#allocation8 + $0x280] sm:$0xff]  ;;  %v191_v14 = vld [vmem:[#allocation8 + $0xe8] sm:$0xff]  ;;  %v188_v16 = vld [vmem:[#allocation8 + $0xd0] sm:$0xff] }
  0x32   :  { %277 = vmatpush.msra.mxu2 %v174_v46  ;;  %297 = vmatpush.msra.mxu3 %v222_v47  ;;  %v239_v15 = vld [vmem:[#allocation8 + $0x268] sm:$0xff]  ;;  %v236_v17 = vld [vmem:[#allocation8 + $0x250] sm:$0xff]  ;;  %v185_v18 = vld [vmem:[#allocation8 + $0xb8] sm:$0xff] }
  0x33   :  { %315 = vmatpush.msrb.mxu0 %v181_v52  ;;  %335 = vmatpush.msrb.mxu1 %v229_v57  ;;  %v233_v19 = vld [vmem:[#allocation8 + $0x238] sm:$0xff]  ;;  %v220_v21 = vld [vmem:[#allocation8 + $0x1d0] sm:$0xff]  ;;  %v182_v22 = vld [vmem:[#allocation8 + $0xa0] sm:$0xff] }
  0x34   :  { %278 = vmatpush.msra.mxu2 %v171_v50  ;;  %298 = vmatpush.msra.mxu3 %v219_v51  ;;  %v169_v20 = vld [vmem:[#allocation8 + $0x38] sm:$0xff]  ;;  %v230_v23 = vld [vmem:[#allocation8 + $0x220] sm:$0xff]  ;;  %v179_v26 = vld [vmem:[#allocation8 + $0x88] sm:$0xff] }
  0x35   :  { %316 = vmatpush.msrb.mxu0 %v178_v56  ;;  %336 = vmatpush.msrb.mxu1 %v226_v61  ;;  %v166_v24 = vld [vmem:[#allocation8 + $0x20] sm:$0xff]  ;;  %v217_v25 = vld [vmem:[#allocation8 + $0x1b8] sm:$0xff]  ;;  %v227_v27 = vld [vmem:[#allocation8 + $0x208] sm:$0xff] }
  0x36   :  { %279 = vmatpush.msra.mxu2 %v168_v54  ;;  %299 = vmatpush.msra.mxu3 %v216_v55  ;;  %v163_v28 = vld [vmem:[#allocation8 + $0x8] sm:$0xff]  ;;  %v214_v29 = vld [vmem:[#allocation8 + $0x1a0] sm:$0xff]  ;;  %v176_v30 = vld [vmem:[#allocation8 + $0x70] sm:$0xff] }
  0x37   :  { %317 = vmatpush.msrb.mxu0 %v175_v60  ;;  %337 = vmatpush.msrb.mxu1 %v223_v3  ;;  %v224_v31 = vld [vmem:[#allocation8 + $0x1f0] sm:$0xff]  ;;  %v211_v32 = vld [vmem:[#allocation8 + $0x188] sm:$0xff]  ;;  %v173_v33 = vld [vmem:[#allocation8 + $0x58] sm:$0xff] }
  0x38   :  { %280 = vmatpush.msra.mxu2 %v165_v58  ;;  %300 = vmatpush.msra.mxu3 %v213_v59  ;;  %v221_v34 = vld [vmem:[#allocation8 + $0x1d8] sm:$0xff]  ;;  %v170_v35 = vld [vmem:[#allocation8 + $0x40] sm:$0xff]  ;;  %v167_v37 = vld [vmem:[#allocation8 + $0x28] sm:$0xff] }
  0x39   :  { %318 = vmatpush.msrb.mxu0 %v172_v2  ;;  %338 = vmatpush.msrb.mxu1 %v220_v21  ;;  %v218_v36 = vld [vmem:[#allocation8 + $0x1c0] sm:$0xff]  ;;  %v215_v38 = vld [vmem:[#allocation8 + $0x1a8] sm:$0xff]  ;;  %v164_v39 = vld [vmem:[#allocation8 + $0x10] sm:$0xff] }
  0x3a   :  { %281 = vmatpush.msra.mxu2 %v162_v62  ;;  %301 = vmatpush.msra.mxu3 %v210_v63  ;;  %v212_v40 = vld [vmem:[#allocation8 + $0x190] sm:$0xff]  ;;  %v420_v41 = vld [vmem:[#allocation10 + $0xf8] sm:$0xff]  ;;  %v418_v45 = vld [vmem:[#allocation10 + $0xe8] sm:$0xff] }
  0x3b   :  { %319 = vmatpush.msrb.mxu0 %v169_v20  ;;  %339 = vmatpush.msrb.mxu1 %v217_v25  ;;  %v419_v42 = vld [vmem:[#allocation10 + $0xf0] sm:$0xff]  ;;  %v404_v43 = vld [vmem:[#allocation10 + $0x78] sm:$0xff]  ;;  %v402_v46 = vld [vmem:[#allocation10 + $0x68] sm:$0xff] }
  0x3c   :  { %346 = vmatpush.msrb.mxu2 %v209_v0  ;;  %366 = vmatpush.msrb.mxu3 %v257_v1  ;;  %v403_v44 = vld [vmem:[#allocation10 + $0x70] sm:$0xff]  ;;  %v417_v47 = vld [vmem:[#allocation10 + $0xe0] sm:$0xff]  ;;  %v416_v49 = vld [vmem:[#allocation10 + $0xd8] sm:$0xff] }
  0x3d   :  { %320 = vmatpush.msrb.mxu0 %v166_v24  ;;  %340 = vmatpush.msrb.mxu1 %v214_v29  ;;  %v401_v48 = vld [vmem:[#allocation10 + $0x60] sm:$0xff]  ;;  %v400_v50 = vld [vmem:[#allocation10 + $0x58] sm:$0xff]  ;;  %v415_v51 = vld [vmem:[#allocation10 + $0xd0] sm:$0xff] }
  0x3e   :  { %347 = vmatpush.msrb.mxu2 %v206_v4  ;;  %367 = vmatpush.msrb.mxu3 %v254_v5  ;;  %v399_v52 = vld [vmem:[#allocation10 + $0x50] sm:$0xff]  ;;  %v414_v53 = vld [vmem:[#allocation10 + $0xc8] sm:$0xff]  ;;  %v413_v55 = vld [vmem:[#allocation10 + $0xc0] sm:$0xff] }
  0x3f   :  { %321 = vmatpush.msrb.mxu0 %v163_v28  ;;  %341 = vmatpush.msrb.mxu1 %v211_v32  ;;  %v398_v54 = vld [vmem:[#allocation10 + $0x48] sm:$0xff]  ;;  %v110_v56 = vld [vmem:[#allocation7] sm:$0x3]  ;;  %v397_v57 = vld [vmem:[#allocation10 + $0x40] sm:$0xff] }
  0x40   :  { %348 = vmatpush.msrb.mxu2 %v203_v6  ;;  %368 = vmatpush.msrb.mxu3 %v251_v7  ;;  %v412_v58 = vld [vmem:[#allocation10 + $0xb8] sm:$0xff]  ;;  %v112_v60 = vperm.slane %v110_v56, 0  ;;  %v113_v61 = vperm.slane %v110_v56, 1  ;;  %v411_v62 = vld [vmem:[#allocation10 + $0xb0] sm:$0xff]  ;;  %v410_v63 = vld [vmem:[#allocation10 + $0xa8] sm:$0xff] }
  0x41   :  { %461 = vmatpush.msra.mxu1 %v420_v41  ;;  %441 = vmatpush.msra.mxu0 %v404_v43  ;;  %v396_v59 = vld [vmem:[#allocation10 + $0x38] sm:$0xff]  ;;  %v409_v4 = vld [vmem:[#allocation10 + $0xa0] sm:$0xff]  ;;  %v391_v24 = vld [vmem:[#allocation10 + $0x10] sm:$0xff] }
  0x42   :  { %349 = vmatpush.msrb.mxu2 %v200_v8  ;;  %369 = vmatpush.msrb.mxu3 %v248_v9  ;;  %v436_v7 = vld [vmem:[#allocation10 + $0x178] sm:$0xff]  ;;  %v435_v8 = vld [vmem:[#allocation10 + $0x170] sm:$0xff]  ;;  %v434_v9 = vld [vmem:[#allocation10 + $0x168] sm:$0xff] }
  0x43   :  { %462 = vmatpush.msra.mxu1 %v419_v42  ;;  %442 = vmatpush.msra.mxu0 %v403_v44  ;;  %v429_v20 = vld [vmem:[#allocation10 + $0x140] sm:$0xff]  ;;  %v392_v21 = vld [vmem:[#allocation10 + $0x18] sm:$0xff]  ;;  %v427_v25 = vld [vmem:[#allocation10 + $0x130] sm:$0xff] }
  0x44   :  { %350 = vmatpush.msrb.mxu2 %v197_v10  ;;  %370 = vmatpush.msrb.mxu3 %v245_v11  ;;  %v433_v10 = vld [vmem:[#allocation10 + $0x160] sm:$0xff]  ;;  %v432_v11 = vld [vmem:[#allocation10 + $0x158] sm:$0xff]  ;;  %v422_v32 = vld [vmem:[#allocation10 + $0x108] sm:$0xff] }
  0x45   :  { %463 = vmatpush.msra.mxu1 %v418_v45  ;;  %443 = vmatpush.msra.mxu0 %v402_v46  ;;  %v389_v28 = vld [vmem:[#allocation10] sm:$0xff] }
  0x46   :  { %351 = vmatpush.msrb.mxu2 %v194_v12  ;;  %371 = vmatpush.msrb.mxu3 %v242_v13  ;;  %v395_v12 = vld [vmem:[#allocation10 + $0x30] sm:$0xff]  ;;  %v408_v13 = vld [vmem:[#allocation10 + $0x98] sm:$0xff]  ;;  %v425_v29 = vld [vmem:[#allocation10 + $0x120] sm:$0xff] }
  0x47   :  { %464 = vmatpush.msra.mxu1 %v417_v47  ;;  %444 = vmatpush.msra.mxu0 %v401_v48 }
  0x48   :  { %352 = vmatpush.msrb.mxu2 %v191_v14  ;;  %372 = vmatpush.msrb.mxu3 %v239_v15  ;;  %v431_v14 = vld [vmem:[#allocation10 + $0x150] sm:$0xff]  ;;  %v394_v15 = vld [vmem:[#allocation10 + $0x28] sm:$0xff] }
  0x49   :  { %465 = vmatpush.msra.mxu1 %v416_v49  ;;  %445 = vmatpush.msra.mxu0 %v400_v50 }
  0x4a   :  { %353 = vmatpush.msrb.mxu2 %v188_v16  ;;  %373 = vmatpush.msrb.mxu3 %v236_v17  ;;  %v407_v16 = vld [vmem:[#allocation10 + $0x90] sm:$0xff]  ;;  %v430_v17 = vld [vmem:[#allocation10 + $0x148] sm:$0xff] }
  0x4b   :  { %466 = vmatpush.msra.mxu1 %v415_v51  ;;  %446 = vmatpush.msra.mxu0 %v399_v52 }
  0x4c   :  { %354 = vmatpush.msrb.mxu2 %v185_v18  ;;  %374 = vmatpush.msrb.mxu3 %v233_v19  ;;  %v393_v18 = vld [vmem:[#allocation10 + $0x20] sm:$0xff]  ;;  %v406_v19 = vld [vmem:[#allocation10 + $0x88] sm:$0xff] }
  0x4d   :  { %467 = vmatpush.msra.mxu1 %v414_v53  ;;  %447 = vmatpush.msra.mxu0 %v398_v54  ;;  %v535_v53 = vld [vmem:[%s770_s6] ss:$0 sm:$0xff] }
  0x4e   :  { %355 = vmatpush.msrb.mxu2 %v182_v22  ;;  %375 = vmatpush.msrb.mxu3 %v230_v23  ;;  %v405_v22 = vld [vmem:[#allocation10 + $0x80] sm:$0xff]  ;;  %v428_v23 = vld [vmem:[#allocation10 + $0x138] sm:$0xff] }
  0x4f   :  { %468 = vmatpush.msra.mxu1 %v413_v55  ;;  %448 = vmatpush.msra.mxu0 %v397_v57 }
  0x50   :  { %356 = vmatpush.msrb.mxu2 %v179_v26  ;;  %376 = vmatpush.msrb.mxu3 %v227_v27  ;;  %v390_v26 = vld [vmem:[#allocation10 + $0x8] sm:$0xff] }
  0x51   :  { %469 = vmatpush.msra.mxu1 %v412_v58  ;;  %449 = vmatpush.msra.mxu0 %v396_v59  ;;  %v426_v27 = vld [vmem:[#allocation10 + $0x128] sm:$0xff] }
  0x52   :  { %357 = vmatpush.msrb.mxu2 %v176_v30  ;;  %377 = vmatpush.msrb.mxu3 %v224_v31  ;;  %v424_v30 = vld [vmem:[#allocation10 + $0x118] sm:$0xff]  ;;  %v423_v31 = vld [vmem:[#allocation10 + $0x110] sm:$0xff] }
  0x53   :  { %470 = vmatpush.msra.mxu1 %v411_v62  ;;  %450 = vmatpush.msra.mxu0 %v395_v12 }
  0x54   :  { %358 = vmatpush.msrb.mxu2 %v173_v33  ;;  %378 = vmatpush.msrb.mxu3 %v221_v34  ;;  %v421_v33 = vld [vmem:[#allocation10 + $0x100] sm:$0xff]  ;;  %v258_v34 = vld [vmem:[%s768_s4] sm:$0x7] }
  0x55   :  { %471 = vmatpush.msra.mxu1 %v410_v63  ;;  %451 = vmatpush.msra.mxu0 %v394_v15  ;;  %v262_v47 = vperm.slane %v258_v34, 2 }
  0x56   :  { %359 = vmatpush.msrb.mxu2 %v170_v35  ;;  %379 = vmatpush.msrb.mxu3 %v218_v36  ;;  %v261_v35 = vperm.slane %v258_v34, 1 }
  0x57   :  { %472 = vmatpush.msra.mxu1 %v409_v4  ;;  %452 = vmatpush.msra.mxu0 %v393_v18 }
  0x58   :  { %360 = vmatpush.msrb.mxu2 %v167_v37  ;;  %380 = vmatpush.msrb.mxu3 %v215_v38 }
  0x59   :  { %473 = vmatpush.msra.mxu1 %v408_v13  ;;  %453 = vmatpush.msra.mxu0 %v392_v21 }
  0x5a   :  { %361 = vmatpush.msrb.mxu2 %v164_v39  ;;  %381 = vmatpush.msrb.mxu3 %v212_v40  ;;  %v260_v39 = vperm.slane %v258_v34, 0 }
  0x5b   :  { %474 = vmatpush.msra.mxu1 %v407_v16  ;;  %454 = vmatpush.msra.mxu0 %v391_v24 }
  0x5d   :  { %475 = vmatpush.msra.mxu1 %v406_v19  ;;  %455 = vmatpush.msra.mxu0 %v390_v26 }
  0x5f   :  { %476 = vmatpush.msra.mxu1 %v405_v22  ;;  %456 = vmatpush.msra.mxu0 %v389_v28 }
  0x9c   :  { %v137_v0 = vpop.f32.mrf.mxu0  ;;  %v157_v1 = vpop.f32.mrf.mxu1 }
  0x9d   :  { %v138_v2 = vadd.f32 %v137_v0, %v112_v60  ;;  %v158_v3 = vadd.f32 %v157_v1, %v113_v61 }
  0x9f   :  { %v160_v5 = vmax.f32 %v138_v2, 0.0  ;;  %v161_v6 = vmax.f32 %v158_v3, 0.0 }
  0xa1   :  { %282 = vmatmul.f32.vlgmr.msra.gmra.mxu2 %v160_v5  ;;  %302 = vmatmul.f32.vlgmr.msra.gmra.mxu3 %v161_v6 }
  0xa2   :  { %322 = vmatmul.f32.vlgmr.msrb.gmra.mxu0 %v160_v5  ;;  %342 = vmatmul.f32.vlgmr.msrb.gmra.mxu1 %v161_v6 }
  0xa3   :  { %481 = vmatpush.msra.mxu2 %v436_v7 }
  0xa5   :  { %482 = vmatpush.msra.mxu2 %v435_v8 }
  0xa7   :  { %483 = vmatpush.msra.mxu2 %v434_v9 }
  0xa9   :  { %362 = vmatmul.f32.vlgmr.msrb.gmra.mxu2 %v160_v5  ;;  %382 = vmatmul.f32.vlgmr.msrb.gmra.mxu3 %v161_v6 }
  0xaa   :  { %484 = vmatpush.msra.mxu2 %v433_v10 }
  0xac   :  { %485 = vmatpush.msra.mxu2 %v432_v11 }
  0xae   :  { %486 = vmatpush.msra.mxu2 %v431_v14 }
  0xb0   :  { %487 = vmatpush.msra.mxu2 %v430_v17 }
  0xb2   :  { %488 = vmatpush.msra.mxu2 %v429_v20 }
  0xb4   :  { %489 = vmatpush.msra.mxu2 %v428_v23 }
  0xb6   :  { %490 = vmatpush.msra.mxu2 %v427_v25 }
  0xb8   :  { %491 = vmatpush.msra.mxu2 %v426_v27 }
  0xba   :  { %492 = vmatpush.msra.mxu2 %v425_v29 }
  0xbc   :  { %493 = vmatpush.msra.mxu2 %v424_v30 }
  0xbe   :  { %494 = vmatpush.msra.mxu2 %v423_v31 }
  0xc0   :  { %495 = vmatpush.msra.mxu2 %v422_v32 }
  0xc2   :  { %496 = vmatpush.msra.mxu2 %v421_v33 }
 0x11f   :  { %v323_v36 = vpop.f32.mrf.mxu0  ;;  %v343_v37 = vpop.f32.mrf.mxu1 }
 0x120   :  { %v324_v38 = vadd.f32 %v323_v36, %v261_v35 }
 0x122   :  { %v344_v40 = vadd.f32 %v343_v37, %v324_v38 }
 0x124   :  { %v387_v41 = vmax.f32 %v344_v40, 0.0  ;;  %v283_v42 = vpop.f32.mrf.mxu2  ;;  %v303_v43 = vpop.f32.mrf.mxu3 }
 0x125   :  { %v284_v44 = vadd.f32 %v283_v42, %v260_v39 }
 0x126   :  { %477 = vmatmul.f32.vlgmr.msra.gmra.mxu1 %v387_v41 }
 0x127   :  { %v304_v45 = vadd.f32 %v303_v43, %v284_v44 }
 0x129   :  { %v386_v46 = vmax.f32 %v304_v45, 0.0 }
 0x12b   :  { %457 = vmatmul.f32.vlgmr.msra.gmra.mxu0 %v386_v46 }
 0x12c   :  { %v363_v48 = vpop.f32.mrf.mxu2  ;;  %v383_v50 = vpop.f32.mrf.mxu3 }
 0x12d   :  { %v364_v49 = vadd.f32 %v363_v48, %v262_v47 }
 0x12f   :  { %v384_v51 = vadd.f32 %v383_v50, %v364_v49 }
 0x131   :  { %v388_v52 = vmax.f32 %v384_v51, 0.0 }
 0x133   :  { %497 = vmatmul.f32.vlgmr.msra.gmra.mxu2 %v388_v52 }
 0x1a3   :  { %v478_v56 = vpop.f32.mrf.mxu1 }
 0x1a8   :  { %v458_v54 = vpop.f32.mrf.mxu0 }
 0x1a9   :  { %v459_v55 = vadd.f32 %v535_v53, %v458_v54 }
 0x1ab   :  { %v479_v57 = vadd.f32 %v478_v56, %v459_v55 }
 0x1b6   :  { %v498_v58 = vpop.f32.mrf.mxu2 }
 0x1b7   :  { %v499_v59 = vadd.f32 %v498_v58, %v479_v57 }
 0x1b9   :  { %501 = vst [vmem:[#allocation11] sm:$0xff] %v499_v59 }
 0x1ba   :  { %512 = dma.vmem_to_hbm [thread:$0]  %s508_s8, 128, %s510_s11, [#allocation4]  }
 0x1bb   :  { %686 = dma.done.wait [#allocation4], 128  }
 0x1bc   :  { %687 = vsyncadd [#allocation4], 4294967168 }
 0x1bd   :  { %517 = vsyncpa [#allocation3], 1 }
 0x1be   :  { %518 = vsyncpa [#allocation6], 1 }
 0x1bf   :  { %519 = vsyncpa [#allocation9], 1 }
 0x1c0   :  { %520 = vsyncpa [#allocation4], 1 }

</bundles_post_ra>
